<compile_context>
chip_gen: v5e
topology: v5e:2x2
jax: 0.10.0
libtpu: 0.0.40
codegen_flags: <defaults>
</compile_context>

<pallas_src>
import jax
import jax.numpy as jnp
from jax.experimental import pallas as pl
from jax.experimental.pallas import tpu as pltpu


def _round_up(n: int, m: int) -> int:
    return ((n + m - 1) // m) * m


def _build_xor_kernel(with_dense: bool):
    """Kernel body; `with_dense` is a static (Python) branch, mirroring the
    hyper-parameter in Model_XOR.__init__.

    p_ref (SMEM, flat f32):
      with_dense=True : [w12[0,0..3], w12[1,0..3], b12[0..3], w3f[0..3], b3]   (17)
      with_dense=False: [wlin[0], wlin[1], blin]                               (3)
    x_ref: (2, TB)  batch on lanes
    y_ref: (1, TB)
    out_ref: (2, TB)  row 0 = prediction, row 1 = per-sample squared error
    """
    if with_dense:
        def kernel(p_ref, x_ref, y_ref, out_ref):
            x0 = x_ref[0:1, :]                       # (1, TB)
            x1 = x_ref[1:2, :]                       # (1, TB)
            pred = jnp.full_like(x0, p_ref[16])      # b3 broadcast
            # unrolled VPU broadcast-FMAs over the 4 hidden features
            for j in range(4):
                z_j = p_ref[8 + j] + p_ref[j] * x0 + p_ref[4 + j] * x1
                r_j = jnp.maximum(z_j, 0.0)          # ReLU
                pred = pred + p_ref[12 + j] * r_j
            diff = pred - y_ref[...]
            out_ref[...] = jnp.concatenate([pred, diff * diff], axis=0)
    else:
        def kernel(p_ref, x_ref, y_ref, out_ref):
            x0 = x_ref[0:1, :]
            x1 = x_ref[1:2, :]
            pred = p_ref[2] + p_ref[0] * x0 + p_ref[1] * x1
            diff = pred - y_ref[...]
            out_ref[...] = jnp.concatenate([pred, diff * diff], axis=0)
    return kernel


def model_xor_forward(x, y, params, *, with_dense=True, block_b=512):
    """Run the XOR-MLP forward pass as a single Pallas TPU kernel.

    x: (B, 2) float32, y: (B, 1) float32
    params: dict with PyTorch-convention weights (out, in) and biases (out,)
    Returns (prediction (B, 1), per-sample squared error (B, 1)).
    """
    B = x.shape[0]
    x = x.astype(jnp.float32)
    y = y.astype(jnp.float32).reshape(B, 1)

    w1 = params["w1"].astype(jnp.float32)            # (4, 2)
    b1 = params["b1"].astype(jnp.float32)            # (4,)
    w3 = params["w3"].astype(jnp.float32)            # (1, 4)
    b3 = params["b3"].astype(jnp.float32)            # (1,)

    if with_dense:
        w2 = params["w2"].astype(jnp.float32)        # (4, 4)
        b2 = params["b2"].astype(jnp.float32)        # (4,)
        # fold dense1 into dense2 (no nonlinearity between them):
        #   z = x @ w12 + b12 ;  out = relu(z) @ w3f + b3
        w12 = w1.T @ w2.T                            # (2, 4)
        b12 = b1 @ w2.T + b2                         # (4,)
        w3f = w3[0]                                  # (4,)
        p = jnp.concatenate([w12.reshape(-1), b12, w3f, b3])     # (17,)
    else:
        # fold the whole (linear) network into a single (2 -> 1) affine map
        wlin = (w1.T @ w3.T).reshape(-1)             # (2,)
        blin = (b1 @ w3.T + b3).reshape(-1)[:1]      # (1,)
        p = jnp.concatenate([wlin, blin])            # (3,)

    # batch-on-lanes layout: pad B to a lane-aligned multiple of the tile
    assert block_b % 128 == 0
    b128 = _round_up(B, 128)
    if b128 <= block_b:
        tb = b128
        b_pad = b128
    else:
        tb = block_b
        b_pad = _round_up(B, tb)

    x_t = jnp.pad(x, ((0, b_pad - B), (0, 0))).T     # (2, b_pad)
    y_t = jnp.pad(y, ((0, b_pad - B), (0, 0))).T     # (1, b_pad)

    kernel = _build_xor_kernel(with_dense)

    out = pl.pallas_call(
        kernel,
        out_shape=jax.ShapeDtypeStruct((2, b_pad), jnp.float32),
        grid=(b_pad // tb,),
        in_specs=[
            pl.BlockSpec(memory_space=pltpu.MemorySpace.SMEM),   # folded weights
            pl.BlockSpec((2, tb), lambda i: (0, i)),             # x tile
            pl.BlockSpec((1, tb), lambda i: (0, i)),             # y tile
        ],
        out_specs=pl.BlockSpec((2, tb), lambda i: (0, i)),       # [pred; sq-err]
        compiler_params=pltpu.CompilerParams(
            dimension_semantics=("parallel",)),
    )(p, x_t, y_t)

    pred = out[0, :B].reshape(B, 1)
    sqerr = out[1, :B].reshape(B, 1)
    return pred, sqerr


def init_params(key):
    """Deterministic PyTorch-style Linear init: U(-1/sqrt(fan_in), 1/sqrt(fan_in))."""
    def linear(key, out_f, in_f):
        kw, kb = jax.random.split(key)
        bound = 1.0 / jnp.sqrt(jnp.float32(in_f))
        w = jax.random.uniform(kw, (out_f, in_f), jnp.float32, -bound, bound)
        b = jax.random.uniform(kb, (out_f,), jnp.float32, -bound, bound)
        return w, b

    k1, k2, k3 = jax.random.split(key, 3)
    w1, b1 = linear(k1, 4, 2)   # dense1: Linear(2, 4)
    w2, b2 = linear(k2, 4, 4)   # dense2: Linear(4, 4)  (only used if with_dense)
    w3, b3 = linear(k3, 1, 4)   # output: Linear(4, 1)
    return {"w1": w1, "b1": b1, "w2": w2, "b2": b2, "w3": w3, "b3": b3}


if __name__ == "__main__":
    key = jax.random.PRNGKey(0)
    kp, kx, _ = jax.random.split(key, 3)

    B = 8  # small batch (padded to 128 lanes inside the wrapper)
    params = init_params(kp)

    # XOR-style inputs: var_x1 in {0,1}^2, var_y = xor label
    bits = jax.random.bernoulli(kx, 0.5, (B, 2)).astype(jnp.float32)
    x = bits
    y = jnp.logical_xor(bits[:, 0] > 0.5, bits[:, 1] > 0.5).astype(jnp.float32)
    y = y.reshape(B, 1)

    # Hyper-parameter branch: run both variants (with and without dense2+ReLU)
    pred_nl, loss_nl = model_xor_forward(x, y, params, with_dense=True)
    pred_lin, loss_lin = model_xor_forward(x, y, params, with_dense=False)
    jax.block_until_ready((pred_nl, loss_nl, pred_lin, loss_lin))

    # Reference check in plain JAX (unfolded weights, PyTorch semantics)
    h_ref = x @ params["w1"].T + params["b1"]
    h_ref = jnp.maximum(h_ref @ params["w2"].T + params["b2"], 0.0)
    pred_ref = h_ref @ params["w3"].T + params["b3"]
    loss_ref = (pred_ref - y) ** 2
    assert jnp.allclose(pred_nl, pred_ref, atol=1e-5), "pred mismatch (with_dense)"
    assert jnp.allclose(loss_nl, loss_ref, atol=1e-5), "loss mismatch (with_dense)"

    h_lin = x @ params["w1"].T + params["b1"]
    pred_lin_ref = h_lin @ params["w3"].T + params["b3"]
    loss_lin_ref = (pred_lin_ref - y) ** 2
    assert jnp.allclose(pred_lin, pred_lin_ref, atol=1e-5), "pred mismatch (linear)"
    assert jnp.allclose(loss_lin, loss_lin_ref, atol=1e-5), "loss mismatch (linear)"

    # TODO(synk): the trw hyper-parameter search / OutputRegression wrapper object
    # have no Pallas equivalent; we expose the prediction and per-sample squared
    # error, which is the data the criterion consumes.

    print("KERNEL_OK")
</pallas_src>

<mosaic_0001>
module attributes {stable_mosaic.version = 11 : i64} {
  func.func @kernel(%arg0: i32, %arg1: memref<17xf32, #tpu.memory_space<smem>>, %arg2: memref<2x128xf32, #tpu.memory_space<vmem>>, %arg3: memref<1x128xf32, #tpu.memory_space<vmem>>, %arg4: memref<2x128xf32, #tpu.memory_space<vmem>>) attributes {dimension_semantics = [#tpu.dimension_semantics<parallel>], iteration_bounds = array<i64: 1>, scalar_prefetch = 0 : i64, scratch_operands = 0 : i64, tpu.core_type = #tpu.core_type<tc>, window_params = [{transform_indices = @transform_0, window_bounds = array<i64: 17>}, {transform_indices = @transform_1, window_bounds = array<i64: 2, 128>}, {transform_indices = @transform_2, window_bounds = array<i64: 1, 128>}, {transform_indices = @transform_3, window_bounds = array<i64: 2, 128>}]} {
    %c0 = arith.constant 0 : index
    %c0_0 = arith.constant 0 : index
    %0 = vector.load %arg2[%c0, %c0_0] : memref<2x128xf32, #tpu.memory_space<vmem>>, vector<1x128xf32>
    %c1 = arith.constant 1 : index
    %c0_1 = arith.constant 0 : index
    %1 = vector.load %arg2[%c1, %c0_1] : memref<2x128xf32, #tpu.memory_space<vmem>>, vector<1x128xf32>
    %c16 = arith.constant 16 : index
    %2 = memref.load %arg1[%c16] : memref<17xf32, #tpu.memory_space<smem>>
    %3 = vector.broadcast %2 : f32 to vector<1x128xf32>
    %c8 = arith.constant 8 : index
    %4 = memref.load %arg1[%c8] : memref<17xf32, #tpu.memory_space<smem>>
    %c0_2 = arith.constant 0 : index
    %5 = memref.load %arg1[%c0_2] : memref<17xf32, #tpu.memory_space<smem>>
    %6 = vector.broadcast %5 : f32 to vector<1x128xf32>
    %7 = arith.mulf %6, %0 : vector<1x128xf32>
    %8 = vector.broadcast %4 : f32 to vector<1x128xf32>
    %9 = arith.addf %8, %7 : vector<1x128xf32>
    %c4 = arith.constant 4 : index
    %10 = memref.load %arg1[%c4] : memref<17xf32, #tpu.memory_space<smem>>
    %11 = vector.broadcast %10 : f32 to vector<1x128xf32>
    %12 = arith.mulf %11, %1 : vector<1x128xf32>
    %13 = arith.addf %9, %12 : vector<1x128xf32>
    %cst = arith.constant 0.000000e+00 : f32
    %14 = vector.broadcast %cst : f32 to vector<1x128xf32>
    %15 = arith.maximumf %13, %14 : vector<1x128xf32>
    %c12 = arith.constant 12 : index
    %16 = memref.load %arg1[%c12] : memref<17xf32, #tpu.memory_space<smem>>
    %17 = vector.broadcast %16 : f32 to vector<1x128xf32>
    %18 = arith.mulf %17, %15 : vector<1x128xf32>
    %19 = arith.addf %3, %18 : vector<1x128xf32>
    %c9 = arith.constant 9 : index
    %20 = memref.load %arg1[%c9] : memref<17xf32, #tpu.memory_space<smem>>
    %c1_3 = arith.constant 1 : index
    %21 = memref.load %arg1[%c1_3] : memref<17xf32, #tpu.memory_space<smem>>
    %22 = vector.broadcast %21 : f32 to vector<1x128xf32>
    %23 = arith.mulf %22, %0 : vector<1x128xf32>
    %24 = vector.broadcast %20 : f32 to vector<1x128xf32>
    %25 = arith.addf %24, %23 : vector<1x128xf32>
    %c5 = arith.constant 5 : index
    %26 = memref.load %arg1[%c5] : memref<17xf32, #tpu.memory_space<smem>>
    %27 = vector.broadcast %26 : f32 to vector<1x128xf32>
    %28 = arith.mulf %27, %1 : vector<1x128xf32>
    %29 = arith.addf %25, %28 : vector<1x128xf32>
    %cst_4 = arith.constant 0.000000e+00 : f32
    %30 = vector.broadcast %cst_4 : f32 to vector<1x128xf32>
    %31 = arith.maximumf %29, %30 : vector<1x128xf32>
    %c13 = arith.constant 13 : index
    %32 = memref.load %arg1[%c13] : memref<17xf32, #tpu.memory_space<smem>>
    %33 = vector.broadcast %32 : f32 to vector<1x128xf32>
    %34 = arith.mulf %33, %31 : vector<1x128xf32>
    %35 = arith.addf %19, %34 : vector<1x128xf32>
    %c10 = arith.constant 10 : index
    %36 = memref.load %arg1[%c10] : memref<17xf32, #tpu.memory_space<smem>>
    %c2 = arith.constant 2 : index
    %37 = memref.load %arg1[%c2] : memref<17xf32, #tpu.memory_space<smem>>
    %38 = vector.broadcast %37 : f32 to vector<1x128xf32>
    %39 = arith.mulf %38, %0 : vector<1x128xf32>
    %40 = vector.broadcast %36 : f32 to vector<1x128xf32>
    %41 = arith.addf %40, %39 : vector<1x128xf32>
    %c6 = arith.constant 6 : index
    %42 = memref.load %arg1[%c6] : memref<17xf32, #tpu.memory_space<smem>>
    %43 = vector.broadcast %42 : f32 to vector<1x128xf32>
    %44 = arith.mulf %43, %1 : vector<1x128xf32>
    %45 = arith.addf %41, %44 : vector<1x128xf32>
    %cst_5 = arith.constant 0.000000e+00 : f32
    %46 = vector.broadcast %cst_5 : f32 to vector<1x128xf32>
    %47 = arith.maximumf %45, %46 : vector<1x128xf32>
    %c14 = arith.constant 14 : index
    %48 = memref.load %arg1[%c14] : memref<17xf32, #tpu.memory_space<smem>>
    %49 = vector.broadcast %48 : f32 to vector<1x128xf32>
    %50 = arith.mulf %49, %47 : vector<1x128xf32>
    %51 = arith.addf %35, %50 : vector<1x128xf32>
    %c11 = arith.constant 11 : index
    %52 = memref.load %arg1[%c11] : memref<17xf32, #tpu.memory_space<smem>>
    %c3 = arith.constant 3 : index
    %53 = memref.load %arg1[%c3] : memref<17xf32, #tpu.memory_space<smem>>
    %54 = vector.broadcast %53 : f32 to vector<1x128xf32>
    %55 = arith.mulf %54, %0 : vector<1x128xf32>
    %56 = vector.broadcast %52 : f32 to vector<1x128xf32>
    %57 = arith.addf %56, %55 : vector<1x128xf32>
    %c7 = arith.constant 7 : index
    %58 = memref.load %arg1[%c7] : memref<17xf32, #tpu.memory_space<smem>>
    %59 = vector.broadcast %58 : f32 to vector<1x128xf32>
    %60 = arith.mulf %59, %1 : vector<1x128xf32>
    %61 = arith.addf %57, %60 : vector<1x128xf32>
    %cst_6 = arith.constant 0.000000e+00 : f32
    %62 = vector.broadcast %cst_6 : f32 to vector<1x128xf32>
    %63 = arith.maximumf %61, %62 : vector<1x128xf32>
    %c15 = arith.constant 15 : index
    %64 = memref.load %arg1[%c15] : memref<17xf32, #tpu.memory_space<smem>>
    %65 = vector.broadcast %64 : f32 to vector<1x128xf32>
    %66 = arith.mulf %65, %63 : vector<1x128xf32>
    %67 = arith.addf %51, %66 : vector<1x128xf32>
    %c0_7 = arith.constant 0 : index
    %c0_8 = arith.constant 0 : index
    %68 = vector.load %arg3[%c0_7, %c0_8] : memref<1x128xf32, #tpu.memory_space<vmem>>, vector<1x128xf32>
    %69 = arith.subf %67, %68 : vector<1x128xf32>
    %70 = arith.mulf %69, %69 : vector<1x128xf32>
    %71 = tpu.concatenate %67, %70 in 0 : vector<1x128xf32>, vector<1x128xf32> -> vector<2x128xf32>
    %c0_9 = arith.constant 0 : index
    %c0_10 = arith.constant 0 : index
    %72 = vector.load %arg4[%c0_9, %c0_10] : memref<2x128xf32, #tpu.memory_space<vmem>>, vector<2x128xf32>
    tpu.vector_store %arg4[%c0_9, %c0_10], %71 {strides = array<i32>} : memref<2x128xf32, #tpu.memory_space<vmem>>, vector<2x128xf32>,
    return
  }
  func.func @transform_0(%arg0: i32) -> i32 {
    %c0_i32 = arith.constant 0 : i32
    %c0_i32_0 = arith.constant 0 : i32
    return %c0_i32 : i32
  }
  func.func @transform_1(%arg0: i32) -> (i32, i32) {
    %c0_i32 = arith.constant 0 : i32
    %c0_i32_0 = arith.constant 0 : i32
    return %c0_i32, %arg0 : i32, i32
  }
  func.func @transform_2(%arg0: i32) -> (i32, i32) {
    %c0_i32 = arith.constant 0 : i32
    %c0_i32_0 = arith.constant 0 : i32
    return %c0_i32, %arg0 : i32, i32
  }
  func.func @transform_3(%arg0: i32) -> (i32, i32) {
    %c0_i32 = arith.constant 0 : i32
    %c0_i32_0 = arith.constant 0 : i32
    return %c0_i32, %arg0 : i32, i32
  }
}

</mosaic_0001>

<bundles_post_ra>
// kernel: tpu_custom_call.1
= control target key start
LH: loop header
LB: loop body
LE: loop exit
PB: predicated region body
PF: predicated region fallthrough
CT: control target
= control target key end

     0   :  { %8 = vsyncpa [#allocation5], 0  ;;  %s265_s0 = inlined_call_operand.hbm [shape: f32[17], index: 0, kind: input, shape index: {}]   ;;  %s266_s1 = inlined_call_operand.hbm [shape: f32[2,128], index: 1, kind: input, shape index: {}]   ;;  %s267_s2 = inlined_call_operand.vmem [shape: f32[1,128], index: 2, kind: input, shape index: {}]   ;;  %s268_s3 = inlined_call_operand.hbm [shape: f32[2,128], index: 3, kind: output, shape index: {}]  }
   0x1   :  { %9 = vsyncpa [#allocation3], 0 }
   0x2   :  { %10 = vsyncpa [#allocation4], 0  ;;  %s16_s14 = sshll.u32 %s265_s0, 4  ;;  %s25_s17 = sshll.u32 %s266_s1, 4  ;;  %s17_s14 = int_to_ptr.hbm [resolvable:$true] %s16_s14  ;;  %s26_s17 = int_to_ptr.hbm [resolvable:$true] %s25_s17 }
   0x3   :  { %s218_s18 = smov [#allocation2]   ;;  %s219_s19 = smov [#allocation6]  }
   0x4   :  { %19 = dma.hbm_to_smem %s17_s14, 16, %s218_s18, [#allocation5]  }
   0x5   :  { %s27_s20 = sshll.u32 %s219_s19, 4  ;;  %s28_s20 = int_to_ptr.vmem [resolvable:$true] %s27_s20 }
   0x6   :  { %30 = dma.hbm_to_vmem [thread:$0]  %s26_s17, 32, %s28_s20, [#allocation3]  }
   0x7   :  { %212 = dma.done.wait [#allocation5], 16  }
   0x8   :  { %213 = vsyncadd [#allocation5], 4294967280 }
   0x9   :  { %214 = dma.done.wait [#allocation3], 32  }
   0xa   :  { %215 = vsyncadd [#allocation3], 4294967264 }
   0xb   :  { %41 = sfence }
   0xc   :  { %s247_s21 = sld [smem:[#allocation2 + $0x10]]  ;;  %v42_v0 = vld [vmem:[#allocation6] sm:$0x1]  ;;  %v43_v1 = vld [vmem:[#allocation6 + $0x1] sm:$0x1]  ;;  %s220_s11 = smov [#allocation7]  }
   0xd   :  { %s134_s0 = sld [smem:[#allocation2 + $0x8]]  ;;  %v106_v46 = vld [vmem:[%s267_s2] sm:$0x1]  ;;  %s120_s12 = sshll.u32 %s220_s11, 4  ;;  %vm112_vm0 = vcmask 1040384   ;;  %s121_s12 = int_to_ptr.vmem [resolvable:$true] %s120_s12 }
   0xe   :  { %s47_s22 = sld [smem:[#allocation2]]  ;;  %s122_s15 = sshll.u32 %s268_s3, 4  ;;  %s123_s15 = int_to_ptr.hbm [resolvable:$true] %s122_s15 }
   0xf   :  { %s135_s23 = sld [smem:[#allocation2 + $0x4]] }
  0x10   :  { %s249_s24 = sld [smem:[#allocation2 + $0xc]] }
  0x11   :  { %s137_s1 = sld [smem:[#allocation2 + $0x9]] }
  0x12   :  { %s138_s25 = sld [smem:[#allocation2 + $0x1]]  ;;  %v45_v17 = vstv %s247_s21 }
  0x13   :  { %s139_s26 = sld [smem:[#allocation2 + $0x5]]  ;;  %v50_v3 = vstv %s134_s0 }
  0x14   :  { %v48_v2 = vstv %s47_s22  ;;  %s251_s27 = sld [smem:[#allocation2 + $0xd]] }
  0x15   :  { %v49_v4 = vmul.f32 %v48_v2, %v42_v0  ;;  %v53_v5 = vstv %s135_s23  ;;  %s141_s28 = sld [smem:[#allocation2 + $0xa]] }
  0x16   :  { %v54_v6 = vmul.f32 %v53_v5, %v43_v1  ;;  %s142_s29 = sld [smem:[#allocation2 + $0x2]]  ;;  %v58_v13 = vstv %s249_s24 }
  0x17   :  { %v51_v7 = vadd.f32 %v50_v3, %v49_v4  ;;  %s143_s30 = sld [smem:[#allocation2 + $0x6]]  ;;  %v65_v9 = vstv %s137_s1 }
  0x18   :  { %v63_v8 = vstv %s138_s25  ;;  %s253_s4 = sld [smem:[#allocation2 + $0xe]] }
  0x19   :  { %v55_v10 = vadd.f32 %v54_v6, %v51_v7  ;;  %v64_v11 = vmul.f32 %v63_v8, %v42_v0  ;;  %v68_v12 = vstv %s139_s26  ;;  %s145_s5 = sld [smem:[#allocation2 + $0xb]] }
  0x1a   :  { %v69_v14 = vmul.f32 %v68_v12, %v43_v1  ;;  %s146_s6 = sld [smem:[#allocation2 + $0x3]]  ;;  %v73_v24 = vstv %s251_s27 }
  0x1b   :  { %v56_v15 = vmax.f32 %v55_v10, 0.0  ;;  %v66_v16 = vadd.f32 %v65_v9, %v64_v11  ;;  %s147_s7 = sld [smem:[#allocation2 + $0x7]]  ;;  %v80_v19 = vstv %s141_s28 }
  0x1c   :  { %v78_v18 = vstv %s142_s29  ;;  %s148_s8 = sld [smem:[#allocation2 + $0xf]] }
  0x1d   :  { %v59_v20 = vmul.f32 %v58_v13, %v56_v15  ;;  %v70_v21 = vadd.f32 %v69_v14, %v66_v16  ;;  %v79_v22 = vmul.f32 %v78_v18, %v42_v0  ;;  %v83_v23 = vstv %s143_s30 }
  0x1e   :  { %v84_v25 = vmul.f32 %v83_v23, %v43_v1  ;;  %v88_v35 = vstv %s253_s4 }
  0x1f   :  { %v60_v26 = vadd.f32 %v59_v20, %v45_v17  ;;  %v71_v27 = vmax.f32 %v70_v21, 0.0  ;;  %v81_v28 = vadd.f32 %v80_v19, %v79_v22  ;;  %v95_v30 = vstv %s145_s5 }
  0x20   :  { %v93_v29 = vstv %s146_s6 }
  0x21   :  { %v74_v31 = vmul.f32 %v73_v24, %v71_v27  ;;  %v85_v32 = vadd.f32 %v84_v25, %v81_v28  ;;  %v94_v33 = vmul.f32 %v93_v29, %v42_v0  ;;  %v98_v34 = vstv %s147_s7 }
  0x22   :  { %v99_v36 = vmul.f32 %v98_v34, %v43_v1  ;;  %v103_v42 = vstv %s148_s8 }
  0x23   :  { %v75_v37 = vadd.f32 %v74_v31, %v60_v26  ;;  %v86_v38 = vmax.f32 %v85_v32, 0.0  ;;  %v96_v39 = vadd.f32 %v95_v30, %v94_v33 }
  0x25   :  { %v89_v40 = vmul.f32 %v88_v35, %v86_v38  ;;  %v100_v41 = vadd.f32 %v99_v36, %v96_v39 }
  0x27   :  { %v90_v43 = vadd.f32 %v89_v40, %v75_v37  ;;  %v101_v44 = vmax.f32 %v100_v41, 0.0 }
  0x29   :  { %v104_v45 = vmul.f32 %v103_v42, %v101_v44 }
  0x2b   :  { %v105_v47 = vadd.f32 %v104_v45, %v90_v43 }
  0x2d   :  { %v107_v48 = vsub.f32 %v105_v47, %v106_v46 }
  0x2f   :  { %v108_v49 = vmul.f32 %v107_v48, %v107_v48 }
  0x31   :  { %v110_v50 = vrot.slane %v108_v49, 7 }
  0x33   :  { %v113_v51 = vsel %vm112_vm0, %v105_v47, %v110_v50 }
  0x34   :  { %114 = vst [vmem:[#allocation7] sm:$0x3] %v113_v51 }
  0x35   :  { %125 = dma.vmem_to_hbm [thread:$0]  %s121_s12, 32, %s123_s15, [#allocation4]  }
  0x36   :  { %216 = dma.done.wait [#allocation4], 32  }
  0x37   :  { %217 = vsyncadd [#allocation4], 4294967264 }
  0x38   :  { %130 = vsyncpa [#allocation3], 1 }
  0x39   :  { %131 = vsyncpa [#allocation4], 1 }
  0x3a   :  { %132 = vsyncpa [#allocation5], 1 }

</bundles_post_ra>
